<compile_context>
chip_gen: v7x
topology: tpu7x:2x2x1
jax: 0.10.0
libtpu: 0.0.40
codegen_flags: <defaults>
</compile_context>

<pallas_src>
import functools
from typing import NamedTuple

import jax
import jax.numpy as jnp
import numpy as np
from jax.experimental import pallas as pl
from jax.experimental.pallas import tpu as pltpu

LN_EPS = 1e-5  # torch.nn.LayerNorm default


def _round_up(x, m):
    return (x + m - 1) // m * m


def _cdiv(a, b):
    return -(-a // b)


class HeadParams(NamedTuple):
    """Pre-padded (and optionally bf16) projection + LayerNorm parameters."""
    w: jax.Array       # [H_pad, E_pad]  projection weight (matmul dtype)
    b: jax.Array       # [1, E_pad]      projection bias (f32)
    gamma: jax.Array   # [1, E_pad]      LayerNorm weight (f32)
    beta: jax.Array    # [1, E_pad]      LayerNorm bias (f32)


def prepare_head_params(w, b, gamma, beta, *, weight_dtype=jnp.bfloat16):
    """Pad params to lane-dense shapes and cast W once, outside any jit.

    Doing this once instead of per call removes a full HBM read+write of W on
    every invocation; bf16 W (default) also halves the dominant W DMA / VMEM
    footprint while the MXU still accumulates in f32.
    """
    H, E = w.shape
    H_pad = _round_up(H, 128)
    E_pad = _round_up(E, 128)
    w_p = jnp.pad(w.astype(jnp.float32), ((0, H_pad - H), (0, E_pad - E)))
    w_p = w_p.astype(weight_dtype)
    b_p = jnp.pad(b.astype(jnp.float32).reshape(1, E), ((0, 0), (0, E_pad - E)))
    g_p = jnp.pad(gamma.astype(jnp.float32).reshape(1, E), ((0, 0), (0, E_pad - E)))
    bt_p = jnp.pad(beta.astype(jnp.float32).reshape(1, E), ((0, 0), (0, E_pad - E)))
    return HeadParams(w_p, b_p, g_p, bt_p)


def _make_head_kernel(e_true, e_pad):
    """Kernel body: out = LayerNorm(cls @ W + b) over the true E features."""
    pad = e_pad - e_true

    def kernel(cls_ref, w_ref, b_ref, gamma_ref, beta_ref, out_ref):
        # Projection on the MXU; f32 accumulation regardless of operand dtype.
        y = jnp.dot(cls_ref[...], w_ref[...],
                    preferred_element_type=jnp.float32)
        y = y + b_ref[...]                        # bias broadcast [1, E_pad]

        # Dropout: inference mode -> identity.
        # TODO(synk): training-mode dropout (pltpu.prng_random_bits mask) not emitted.

        # LayerNorm over the true embedding dim, all in f32 (v5e has no bf16
        # VPU/EUP). Padded lanes of y are exactly zero (W columns / bias are
        # zero-padded), so the mean-sum is already correct, and each padded
        # lane contributes exactly mean^2 to sum(centered^2) -> subtract that
        # analytically instead of building an iota/where mask.
        inv_e = jnp.float32(1.0 / e_true)
        mean = jnp.sum(y, axis=-1, keepdims=True) * inv_e
        centered = y - mean
        ssq = jnp.sum(centered * centered, axis=-1, keepdims=True)
        if pad:
            ssq = ssq - jnp.float32(pad) * (mean * mean)
        normed = centered * jax.lax.rsqrt(ssq * inv_e + LN_EPS)
        out_ref[...] = (normed * gamma_ref[...] + beta_ref[...]).astype(out_ref.dtype)

    return kernel


@functools.partial(jax.jit,
                   static_argnames=("embedding_dim", "block_b", "out_dtype"))
def text_encoder_head(last_hidden_state, params: HeadParams, *,
                      embedding_dim, block_b=512, out_dtype=jnp.float32):
    """Projection + (eval) dropout + LayerNorm head of TextEncoder.forward."""
    B, S, H = last_hidden_state.shape
    H_pad, E_pad = params.w.shape
    E = embedding_dim

    # CLS token selection in the wrapper: a clean [B, H] kernel input, cast to
    # the matmul dtype (cheap B*H op, fused by XLA with the slice / pad).
    # TODO(synk): for very long S / huge B the CLS gather could be a manual
    # strided make_async_copy from last_hidden_state (memory_space=pl.ANY).
    cls = last_hidden_state[:, 0, :].astype(params.w.dtype)

    # Batch tiling: large tiles (up to block_b rows) for pipeline efficiency,
    # but at least 2 grid steps when B allows so the 'parallel' axis shards
    # across both TensorCores on v7x; TB picked to minimize batch padding.
    n_tiles = max(_cdiv(B, block_b), 2 if B >= 16 else 1)
    TB = _round_up(_cdiv(B, n_tiles), 8)
    n_tiles = _cdiv(B, TB)
    B_pad = n_tiles * TB

    if B_pad != B or H_pad != H:
        cls = jnp.pad(cls, ((0, B_pad - B), (0, H_pad - H)))

    # Explicit VMEM budget: resident W (+headroom for double buffering) plus
    # double-buffered cls / out tiles and the small LN params.
    in_itemsize = jnp.dtype(params.w.dtype).itemsize
    out_itemsize = jnp.dtype(out_dtype).itemsize
    w_bytes = H_pad * E_pad * in_itemsize
    cls_bytes = TB * H_pad * in_itemsize
    out_bytes = TB * E_pad * out_itemsize
    small_bytes = 3 * E_pad * 4
    vmem_limit = int(2 * (w_bytes + cls_bytes + out_bytes + small_bytes) + (8 << 20))
    vmem_limit = min(vmem_limit, 128 << 20)

    cost = pl.CostEstimate(
        flops=2 * B_pad * H_pad * E_pad,
        transcendentals=0,
        bytes_accessed=(B_pad * H_pad * in_itemsize + w_bytes + small_bytes
                        + B_pad * E_pad * out_itemsize),
    )

    out_p = pl.pallas_call(
        _make_head_kernel(E, E_pad),
        out_shape=jax.ShapeDtypeStruct((B_pad, E_pad), out_dtype),
        grid=(n_tiles,),
        in_specs=[
            pl.BlockSpec((TB, H_pad), lambda i: (i, 0)),     # CLS activations
            pl.BlockSpec((H_pad, E_pad), lambda i: (0, 0)),  # W (VMEM-resident)
            pl.BlockSpec((1, E_pad), lambda i: (0, 0)),      # bias
            pl.BlockSpec((1, E_pad), lambda i: (0, 0)),      # LN gamma
            pl.BlockSpec((1, E_pad), lambda i: (0, 0)),      # LN beta
        ],
        out_specs=pl.BlockSpec((TB, E_pad), lambda i: (i, 0)),
        compiler_params=pltpu.CompilerParams(
            dimension_semantics=("parallel",),
            vmem_limit_bytes=vmem_limit),
        cost_estimate=cost,
    )(cls, params.w, params.b, params.gamma, params.beta)

    # TODO(synk): for heads where W alone overflows VMEM (esp. v7x's 64 MiB),
    # add a second grid axis tiling E with a two-pass LayerNorm and/or fp8 W.
    if B_pad == B and E_pad == E:
        return out_p
    return out_p[:B, :E]


def reference_head(last_hidden_state, w, b, gamma, beta):
    cls = last_hidden_state[:, 0, :]
    y = cls @ w + b
    mean = jnp.mean(y, axis=-1, keepdims=True)
    var = jnp.mean((y - mean) ** 2, axis=-1, keepdims=True)
    return ((y - mean) * jax.lax.rsqrt(var + LN_EPS)) * gamma + beta


if __name__ == "__main__":
    # Small synthetic shapes consistent with the module's forward:
    #   transformer hidden_size H, config.embedding_dim E, batch B, seq S.
    B, S, H, E = 2, 8, 32, 32

    key = jax.random.PRNGKey(0)
    k_hs, k_w, k_b, k_g, k_be = jax.random.split(key, 5)

    # Synthetic "transformer output" (stands in for the pretrained LM output).
    last_hidden_state = jax.random.normal(k_hs, (B, S, H), dtype=jnp.float32)

    # Deterministic parameter init (projection Linear + LayerNorm affine).
    w = jax.random.normal(k_w, (H, E), dtype=jnp.float32) * (1.0 / np.sqrt(H))
    b = jax.random.normal(k_b, (E,), dtype=jnp.float32) * 0.01
    gamma = 1.0 + 0.1 * jax.random.normal(k_g, (E,), dtype=jnp.float32)
    beta = 0.1 * jax.random.normal(k_be, (E,), dtype=jnp.float32)

    ref = reference_head(last_hidden_state, w, b, gamma, beta)

    # f32-operand matmul path: tight check against the PyTorch-equivalent math.
    params_f32 = prepare_head_params(w, b, gamma, beta, weight_dtype=jnp.float32)
    out_f32 = text_encoder_head(last_hidden_state, params_f32, embedding_dim=E)
    out_f32 = jax.block_until_ready(out_f32)
    assert out_f32.shape == (B, E)
    np.testing.assert_allclose(np.asarray(out_f32), np.asarray(ref),
                               rtol=1e-5, atol=1e-5)

    # Default path: bf16 weights persisted outside jit (halved W DMA / VMEM),
    # f32 MXU accumulation + f32 LayerNorm -> looser tolerance.
    params_bf16 = prepare_head_params(w, b, gamma, beta)
    out_bf16 = text_encoder_head(last_hidden_state, params_bf16, embedding_dim=E)
    out_bf16 = jax.block_until_ready(out_bf16)
    np.testing.assert_allclose(np.asarray(out_bf16), np.asarray(ref),
                               rtol=3e-2, atol=3e-2)

    print("KERNEL_OK")
</pallas_src>

<mosaic_0001>
module attributes {stable_mosaic.version = 11 : i64} {
  func.func @kernel(%arg0: i32, %arg1: memref<8x128xf32, #tpu.memory_space<vmem>>, %arg2: memref<128x128xf32, #tpu.memory_space<vmem>>, %arg3: memref<1x128xf32, #tpu.memory_space<vmem>>, %arg4: memref<1x128xf32, #tpu.memory_space<vmem>>, %arg5: memref<1x128xf32, #tpu.memory_space<vmem>>, %arg6: memref<8x128xf32, #tpu.memory_space<vmem>>) attributes {dimension_semantics = [#tpu.dimension_semantics<parallel>], iteration_bounds = array<i64: 1>, scalar_prefetch = 0 : i64, scratch_operands = 0 : i64, tpu.core_type = #tpu.core_type<tc>, window_params = [{transform_indices = @transform_0, window_bounds = array<i64: 8, 128>}, {pipeline_mode = #tpu.pipeline_mode<synchronous>, transform_indices = @transform_1, window_bounds = array<i64: 128, 128>}, {pipeline_mode = #tpu.pipeline_mode<synchronous>, transform_indices = @transform_2, window_bounds = array<i64: 1, 128>}, {pipeline_mode = #tpu.pipeline_mode<synchronous>, transform_indices = @transform_3, window_bounds = array<i64: 1, 128>}, {pipeline_mode = #tpu.pipeline_mode<synchronous>, transform_indices = @transform_4, window_bounds = array<i64: 1, 128>}, {transform_indices = @transform_5, window_bounds = array<i64: 8, 128>}]} {
    %c0 = arith.constant 0 : index
    %c0_0 = arith.constant 0 : index
    %0 = vector.load %arg1[%c0, %c0_0] : memref<8x128xf32, #tpu.memory_space<vmem>>, vector<8x128xf32>
    %c0_1 = arith.constant 0 : index
    %c0_2 = arith.constant 0 : index
    %1 = vector.load %arg2[%c0_1, %c0_2] : memref<128x128xf32, #tpu.memory_space<vmem>>, vector<128x128xf32>
    %cst = arith.constant dense<0.000000e+00> : vector<8x128xf32>
    %2 = tpu.matmul %0, %1, %cst {dimension_numbers = #tpu.dot_dimension_numbers<[1], [0], [0], [1], [0, 0, 1, 1], [], []>} : vector<8x128xf32>, vector<128x128xf32>, vector<8x128xf32> -> vector<8x128xf32>
    %c0_3 = arith.constant 0 : index
    %c0_4 = arith.constant 0 : index
    %3 = vector.load %arg3[%c0_3, %c0_4] : memref<1x128xf32, #tpu.memory_space<vmem>>, vector<1x128xf32>
    %4 = vector.broadcast %3 : vector<1x128xf32> to vector<8x128xf32>
    %5 = arith.addf %2, %4 : vector<8x128xf32>
    %cst_5 = arith.constant dense<0.000000e+00> : vector<8xf32>
    %6 = vector.multi_reduction <add>, %5, %cst_5 [1] : vector<8x128xf32> to vector<8xf32>
    %7 = vector.shape_cast %6 : vector<8xf32> to vector<8x1xf32>
    %cst_6 = arith.constant 3.125000e-02 : f32
    %8 = vector.broadcast %cst_6 : f32 to vector<8x1xf32>
    %9 = arith.mulf %7, %8 : vector<8x1xf32>
    %10 = vector.broadcast %9 : vector<8x1xf32> to vector<8x128xf32>
    %11 = arith.subf %5, %10 : vector<8x128xf32>
    %12 = arith.mulf %11, %11 : vector<8x128xf32>
    %cst_7 = arith.constant dense<0.000000e+00> : vector<8xf32>
    %13 = vector.multi_reduction <add>, %12, %cst_7 [1] : vector<8x128xf32> to vector<8xf32>
    %14 = vector.shape_cast %13 : vector<8xf32> to vector<8x1xf32>
    %15 = arith.mulf %9, %9 : vector<8x1xf32>
    %cst_8 = arith.constant 9.600000e+01 : f32
    %16 = vector.broadcast %cst_8 : f32 to vector<8x1xf32>
    %17 = arith.mulf %16, %15 : vector<8x1xf32>
    %18 = arith.subf %14, %17 : vector<8x1xf32>
    %cst_9 = arith.constant 3.125000e-02 : f32
    %19 = vector.broadcast %cst_9 : f32 to vector<8x1xf32>
    %20 = arith.mulf %18, %19 : vector<8x1xf32>
    %cst_10 = arith.constant 9.99999974E-6 : f32
    %21 = vector.broadcast %cst_10 : f32 to vector<8x1xf32>
    %22 = arith.addf %20, %21 : vector<8x1xf32>
    %23 = math.rsqrt %22 : vector<8x1xf32>
    %24 = vector.broadcast %23 : vector<8x1xf32> to vector<8x128xf32>
    %25 = arith.mulf %11, %24 : vector<8x128xf32>
    %c0_11 = arith.constant 0 : index
    %c0_12 = arith.constant 0 : index
    %26 = vector.load %arg4[%c0_11, %c0_12] : memref<1x128xf32, #tpu.memory_space<vmem>>, vector<1x128xf32>
    %27 = vector.broadcast %26 : vector<1x128xf32> to vector<8x128xf32>
    %28 = arith.mulf %25, %27 : vector<8x128xf32>
    %c0_13 = arith.constant 0 : index
    %c0_14 = arith.constant 0 : index
    %29 = vector.load %arg5[%c0_13, %c0_14] : memref<1x128xf32, #tpu.memory_space<vmem>>, vector<1x128xf32>
    %30 = vector.broadcast %29 : vector<1x128xf32> to vector<8x128xf32>
    %31 = arith.addf %28, %30 : vector<8x128xf32>
    %c0_15 = arith.constant 0 : index
    %c0_16 = arith.constant 0 : index
    %32 = vector.load %arg6[%c0_15, %c0_16] : memref<8x128xf32, #tpu.memory_space<vmem>>, vector<8x128xf32>
    tpu.vector_store %arg6[%c0_15, %c0_16], %31 {strides = array<i32>} : memref<8x128xf32, #tpu.memory_space<vmem>>, vector<8x128xf32>,
    return
  }
  func.func @transform_0(%arg0: i32) -> (i32, i32) {
    %c0_i32 = arith.constant 0 : i32
    %c0_i32_0 = arith.constant 0 : i32
    return %arg0, %c0_i32 : i32, i32
  }
  func.func @transform_1(%arg0: i32) -> (i32, i32) {
    %c0_i32 = arith.constant 0 : i32
    %c0_i32_0 = arith.constant 0 : i32
    %c0_i32_1 = arith.constant 0 : i32
    return %c0_i32, %c0_i32_0 : i32, i32
  }
  func.func @transform_2(%arg0: i32) -> (i32, i32) {
    %c0_i32 = arith.constant 0 : i32
    %c0_i32_0 = arith.constant 0 : i32
    %c0_i32_1 = arith.constant 0 : i32
    return %c0_i32, %c0_i32_0 : i32, i32
  }
  func.func @transform_3(%arg0: i32) -> (i32, i32) {
    %c0_i32 = arith.constant 0 : i32
    %c0_i32_0 = arith.constant 0 : i32
    %c0_i32_1 = arith.constant 0 : i32
    return %c0_i32, %c0_i32_0 : i32, i32
  }
  func.func @transform_4(%arg0: i32) -> (i32, i32) {
    %c0_i32 = arith.constant 0 : i32
    %c0_i32_0 = arith.constant 0 : i32
    %c0_i32_1 = arith.constant 0 : i32
    return %c0_i32, %c0_i32_0 : i32, i32
  }
  func.func @transform_5(%arg0: i32) -> (i32, i32) {
    %c0_i32 = arith.constant 0 : i32
    %c0_i32_0 = arith.constant 0 : i32
    return %arg0, %c0_i32 : i32, i32
  }
}

</mosaic_0001>

<bundles_post_ra>
// kernel: text_encoder_head.1
= control target key start
LH: loop header
LB: loop body
LE: loop exit
PB: predicated region body
PF: predicated region fallthrough
CT: control target
= control target key end

     0   :  { %10 = vsyncpa [#allocation3], 0  ;;  %s275_s18 = smov [#allocation2]   ;;  %s338_s0 = inlined_call_operand.vmem [shape: f32[8,128], index: 0, kind: input, shape index: {}]   ;;  %s339_s1 = inlined_call_operand.hbm [shape: f32[128,128], index: 1, kind: input, shape index: {}]   ;;  %s340_s2 = inlined_call_operand.vmem [shape: f32[1,128], index: 2, kind: input, shape index: {}]   ;;  %s341_s3 = inlined_call_operand.vmem [shape: f32[1,128], index: 3, kind: input, shape index: {}]   ;;  %s342_s4 = inlined_call_operand.vmem [shape: f32[1,128], index: 4, kind: input, shape index: {}]   ;;  %s343_s5 = inlined_call_operand.vmem [shape: f32[8,128], index: 5, kind: output, shape index: {}]  }
   0x1   :  { %s18_s19 = sshll.u32 %s275_s18, 4  ;;  %s251_s22 = scalar_lea.hbm %s339_s1, 2048  ;;  %s19_s19 = int_to_ptr.vmem [resolvable:$true] %s18_s19 }
   0x2   :  { %p252_p0 = scmp.ne.s32.totalorder %s339_s1, %s251_s22  ;;  %p255_p1 = scmp.lt.u32.totalorder %s251_s22, %s339_s1 }
   0x4   :  { %p257_p2 = pnand %p255_p1, %p252_p0 }
   0x6   :  { %260 = shalt.err (!%p257_p2)
}
   0x7   :  { %s261_s27 = scalar_lea.vmem %s19_s19, 2048  ;;  %p266_p4 = scmp.lt.s32.totalorder %s19_s19, %s19_s19 }
   0x8   :  { %p262_p3 = scmp.ne.s32.totalorder %s19_s19, %s261_s27  ;;  %p267_p5 = scmp.lt.s32.totalorder %s261_s27, %s261_s27 }
   0xa   :  { %p268_p6 = por %p267_p5, %p266_p4 }
   0xc   :  { %p269_p7 = pnand %p268_p6, %p262_p3 }
   0xe   :  { %272 = shalt.err (!%p269_p7)
}
   0xf   :  { %s276_s28 = smov 128   ;;  %s277_s29 = smov 8  }
  0x10   :  { %24 = dma.hbm_to_vmem [thread:$0]  %s339_s1, 2048, %s19_s19, [#allocation3], %s276_s28, %s276_s28, %s277_s29  }
  0x11   :  { %273 = dma.done.wait [#allocation3], 2048  }
  0x12   :  { %274 = vsyncadd [#allocation3], 4294965248  ;;  %v278_v0 = vmov 0.0|0.0   ;;  %vm279_vm0 = vmmov 0   ;;  %v280_v1 = vmov 0.0   ;;  %v35_v2 = vld [vmem:[#allocation2] sm:$0xff] }
  0x13   :  { %219 = vmatprep.subr.bf16.mxu0 %v278_v0  ;;  %216 = vmatprep.mubr.msk.f32.mxu0 %vm279_vm0, %v280_v1  ;;  %v36_v3 = vld [vmem:[#allocation2 + $0x8] sm:$0xff]  ;;  %v37_v4 = vld [vmem:[#allocation2 + $0x10] sm:$0xff]  ;;  %v38_v6 = vld [vmem:[#allocation2 + $0x18] sm:$0xff] }
  0x14   :  { %v220_v5 = vpack.c.bf16 %v36_v3, %v35_v2  ;;  %v223_v7 = vpack.c.bf16 %v38_v6, %v37_v4  ;;  %v39_v8 = vld [vmem:[#allocation2 + $0x20] sm:$0xff]  ;;  %v40_v9 = vld [vmem:[#allocation2 + $0x28] sm:$0xff]  ;;  %v41_v11 = vld [vmem:[#allocation2 + $0x30] sm:$0xff] }
  0x15   :  { %v226_v10 = vpack.c.bf16 %v40_v9, %v39_v8  ;;  %v42_v12 = vld [vmem:[#allocation2 + $0x38] sm:$0xff]  ;;  %v43_v14 = vld [vmem:[#allocation2 + $0x40] sm:$0xff]  ;;  %v44_v15 = vld [vmem:[#allocation2 + $0x48] sm:$0xff] }
  0x16   :  { %221 = vmatpush3.bf16.msra.mxu0 %v220_v5  ;;  %v229_v13 = vpack.c.bf16 %v42_v12, %v41_v11  ;;  %v232_v16 = vpack.c.bf16 %v44_v15, %v43_v14  ;;  %v45_v17 = vld [vmem:[#allocation2 + $0x50] sm:$0xff]  ;;  %v46_v18 = vld [vmem:[#allocation2 + $0x58] sm:$0xff]  ;;  %v47_v20 = vld [vmem:[#allocation2 + $0x60] sm:$0xff] }
  0x17   :  { %222 = vmatprep.subr.bf16.mxu0 %v278_v0  ;;  %v235_v19 = vpack.c.bf16 %v46_v18, %v45_v17  ;;  %v48_v21 = vld [vmem:[#allocation2 + $0x68] sm:$0xff]  ;;  %v49_v23 = vld [vmem:[#allocation2 + $0x70] sm:$0xff]  ;;  %v50_v24 = vld [vmem:[#allocation2 + $0x78] sm:$0xff] }
  0x18   :  { %v238_v22 = vpack.c.bf16 %v48_v21, %v47_v20  ;;  %v241_v25 = vpack.c.bf16 %v50_v24, %v49_v23  ;;  %v34_v26 = vld [vmem:[%s338_s0] sm:$0xff] }
  0x19   :  { %v164_v27 = vld [vmem:[%s340_s2] ss:$0 sm:$0xff] }
  0x1a   :  { %224 = vmatpush3.bf16.msra.mxu0 %v223_v7  ;;  %v165_v42 = vld [vmem:[%s341_s3] ss:$0 sm:$0xff] }
  0x1b   :  { %225 = vmatprep.subr.bf16.mxu0 %v278_v0  ;;  %v166_v44 = vld [vmem:[%s342_s4] ss:$0 sm:$0xff] }
  0x1e   :  { %227 = vmatpush3.bf16.msra.mxu0 %v226_v10 }
  0x1f   :  { %228 = vmatprep.subr.bf16.mxu0 %v278_v0 }
  0x22   :  { %230 = vmatpush3.bf16.msra.mxu0 %v229_v13 }
  0x23   :  { %231 = vmatprep.subr.bf16.mxu0 %v278_v0 }
  0x26   :  { %233 = vmatpush3.bf16.msra.mxu0 %v232_v16 }
  0x27   :  { %234 = vmatprep.subr.bf16.mxu0 %v278_v0 }
  0x2a   :  { %236 = vmatpush3.bf16.msra.mxu0 %v235_v19 }
  0x2b   :  { %237 = vmatprep.subr.bf16.mxu0 %v278_v0 }
  0x2e   :  { %239 = vmatpush3.bf16.msra.mxu0 %v238_v22 }
  0x2f   :  { %240 = vmatprep.subr.bf16.mxu0 %v278_v0 }
  0x32   :  { %242 = vmatpush3.bf16.msra.mxu0 %v241_v25 }
  0x35   :  { %217 = vmatmul.mubr.f32.vlgmr.msra.gmra.mrb[0].mxu0 %v34_v26 }
 0x108   :  { %v124_v28 = vpop.f32.mrb[0].mxu0 }
 0x109   :  { %v125_v29 = vadd.f32 %v164_v27, %v124_v28  ;;  %v218_v30 = vpop.f32.mrb[1].mxu0 }
 0x10b   :  { %128 = vadd.xlane.f32.xlu0 %v125_v29 }
 0x198   :  { %v129_v31 = vpop.xlane.xlu0 %128 }
 0x199   :  { %v130_v32 = vmul.f32 0.03125, %v129_v31 }
 0x19b   :  { %v131_v33 = vsub.f32 %v125_v29, %v130_v32  ;;  %v135_v35 = vmul.f32 %v130_v32, %v130_v32 }
 0x19d   :  { %v132_v34 = vmul.f32 %v131_v33, %v131_v33  ;;  %v136_v36 = vmul.f32 96.0, %v135_v35 }
 0x19f   :  { %133 = vadd.xlane.f32.xlu0 %v132_v34 }
 0x22c   :  { %v134_v37 = vpop.xlane.xlu0 %133 }
 0x22d   :  { %v137_v38 = vsub.f32 %v134_v37, %v136_v36 }
 0x22f   :  { %v138_v39 = vmul.f32 0.03125, %v137_v38 }
 0x231   :  { %v139_v40 = vadd.f32 1e-05, %v138_v39 }
 0x233   :  { %249 = vrsqrt.f32 %v139_v40 }
 0x23d   :  { %v250_v41 = vpop.eup %249 }
 0x23e   :  { %v141_v43 = vmul.f32 %v250_v41, %v131_v33 }
 0x240   :  { %v149_v45 = vmul.f32 %v165_v42, %v141_v43 }
 0x242   :  { %v157_v46 = vadd.f32 %v166_v44, %v149_v45 }
 0x244   :  { %158 = vst [vmem:[%s343_s5] sm:$0xff] %v157_v46 }
 0x245   :  { %163 = vsyncpa [#allocation3], 1 }

</bundles_post_ra>
